<compile_context>
chip_gen: v5e
topology: v5e:2x2
jax: 0.10.0
libtpu: 0.0.40
codegen_flags: <defaults>
</compile_context>

<pallas_src>
import math
from functools import partial

import jax
import jax.numpy as jnp
from jax.experimental import pallas as pl
from jax.experimental.pallas import tpu as pltpu


# ---------------------------------------------------------------------------
# Parameter setup (deterministic, mirrors PositionalEncoding.__init__)
# ---------------------------------------------------------------------------
def make_pos_embedding(emb_size: int, maxlen: int = 5000) -> jnp.ndarray:
    """Returns pos_embedding of shape (maxlen, 1, emb_size), float32."""
    den = jnp.exp(-jnp.arange(0, emb_size, 2, dtype=jnp.float32)
                  * (math.log(10000.0) / emb_size))            # (emb//2,)
    pos = jnp.arange(0, maxlen, dtype=jnp.float32)[:, None]     # (maxlen, 1)
    pe = jnp.zeros((maxlen, emb_size), dtype=jnp.float32)
    pe = pe.at[:, 0::2].set(jnp.sin(pos * den))
    pe = pe.at[:, 1::2].set(jnp.cos(pos * den))
    return pe[:, None, :]                                       # (maxlen, 1, E)


# ---------------------------------------------------------------------------
# Pallas kernels
# ---------------------------------------------------------------------------
def _pe_add_kernel(x_ref, pos_ref, o_ref, *, emb_scale):
    # (ts, B, E) * emb_scale + (ts, 1, E) broadcast over batch.  f32 math,
    # cast on store (supports bf16 output to halve writeback bytes).
    x = x_ref[...].astype(jnp.float32)
    if emb_scale != 1.0:                       # static: skip the mul when 1.0
        x = x * jnp.float32(emb_scale)
    o_ref[...] = (x + pos_ref[...]).astype(o_ref.dtype)


def _tile_seed(seed_scalar):
    # Hash the (user seed, tile id) pair instead of seed + program_id so that
    # adjacent tiles never get consecutive-integer PRNG seeds (which can be
    # statistically correlated).  int32 wrap-around is intentional.
    tile = pl.program_id(0) + jnp.int32(1)
    return (seed_scalar * jnp.int32(-1640531535)        # 2654435761 as int32
            + tile * jnp.int32(-1640531527))             # 0x9E3779B9 as int32


def _pe_add_dropout_prng_kernel(seed_ref, x_ref, pos_ref, o_ref, *,
                                emb_scale, keep_threshold, keep_scale):
    # TPU path: hardware PRNG inside the kernel (no extra HBM traffic).  The
    # compare/select is free VPU filler under the HBM roofline on all gens.
    x = x_ref[...].astype(jnp.float32)
    if emb_scale != 1.0:
        x = x * jnp.float32(emb_scale)
    y = x + pos_ref[...]
    pltpu.prng_seed(_tile_seed(seed_ref[0]))
    bits = pltpu.prng_random_bits(y.shape)
    if bits.dtype != jnp.uint32:
        bits = pltpu.bitcast(bits, jnp.uint32)
    # Integer-threshold compare: P(keep) = 1 - p (threshold = round(p * 2^32),
    # clamped to 2^32-1, so p ~ 1.0 keeps with prob ~2^-32 instead of exactly 0).
    keep = bits >= jnp.uint32(keep_threshold)
    o_ref[...] = jnp.where(keep, y * jnp.float32(keep_scale), 0.0).astype(o_ref.dtype)


def _pe_add_dropout_bits_kernel(x_ref, pos_ref, bits_ref, o_ref, *,
                                emb_scale, keep_threshold, keep_scale):
    # Portable fallback (non-TPU backends / interpret mode): random bits are
    # generated host-side with jax.random and streamed in like a normal operand.
    x = x_ref[...].astype(jnp.float32)
    if emb_scale != 1.0:
        x = x * jnp.float32(emb_scale)
    y = x + pos_ref[...]
    keep = bits_ref[...] >= jnp.uint32(keep_threshold)
    o_ref[...] = jnp.where(keep, y * jnp.float32(keep_scale), 0.0).astype(o_ref.dtype)


# ---------------------------------------------------------------------------
# Wrapper
# ---------------------------------------------------------------------------
def _cdiv(a, b):
    return -(-a // b)


def _choose_seq_tile(S, B, E, itemsize, target_tile_bytes):
    """Largest seq tile whose x-block is <= target_tile_bytes, then rounded so
    S is split as evenly as possible (no tiny tail block)."""
    ts = max(1, target_tile_bytes // max(1, B * E * itemsize))
    ts = min(S, ts)
    ts = _cdiv(S, _cdiv(S, ts))     # even split; never exceeds the cap above
    return int(ts)


def positional_encoding(token_embedding: jnp.ndarray,
                        pos_embedding: jnp.ndarray,
                        dropout_p: float = 0.0,
                        training: bool = False,
                        emb_scale: float = 1.0,
                        seed: int = 0,
                        rng_key=None,
                        out_dtype=None,
                        donate_input: bool = False,
                        target_tile_bytes: int = 8 * 1024 * 1024,
                        vmem_limit_bytes: int = 48 * 1024 * 1024) -> jnp.ndarray:
    """Fused Dropout(emb_scale * token_embedding + pos_embedding[:S]).

    token_embedding: (S, B, E); pos_embedding: (maxlen, 1, E) float32.
    emb_scale: set to sqrt(E) to fuse TokenEmbedding's scale (WMTModel path).

    Performance notes (review-driven):
      * ~8 MiB x/out blocks amortize the ~0.35 us per-grid-step overhead to a
        few percent on v6e and stay worthwhile on v7x's faster HBM.
      * vmem_limit_bytes defaults to 48 MiB: double-buffered working set
        (~2 x (x + out) blocks + tiny pos blocks) ~ 32 MiB, which fits v7x's
        64 MiB physical VMEM; v5e/v6e (128 MiB) could go bigger if desired.
      * E should ideally be a multiple of 128 (WMT's 512 is) and B >= 8 for
        lane/sublane-dense stores; smaller B/E still works, just padded.
      * prefer out_dtype=bfloat16 at training call sites to halve writeback.
      * in eval mode with no fusion opportunity, letting XLA fuse the add into
        neighbours can beat a standalone pallas_call (fusion barrier); the
        dropout-PRNG / scale-fused path is where this kernel earns its keep.
    """
    S, B, E = token_embedding.shape
    maxlen = pos_embedding.shape[0]
    assert S <= maxlen, "sequence longer than positional table"
    out_dtype = token_embedding.dtype if out_dtype is None else jnp.dtype(out_dtype)

    ts = _choose_seq_tile(S, B, E, token_embedding.dtype.itemsize,
                          target_tile_bytes)
    grid = (pl.cdiv(S, ts),)   # partial tail block (if any) is masked by Pallas

    x_spec = pl.BlockSpec((ts, B, E), lambda i, *_: (i, 0, 0))
    # Full pos table is passed in; the i-th seq tile reads block i of the table
    # directly -- no (S,1,E) HBM slice materialized in the wrapper.
    p_spec = pl.BlockSpec((ts, 1, E), lambda i, *_: (i, 0, 0))
    o_spec = pl.BlockSpec((ts, B, E), lambda i, *_: (i, 0, 0))
    out_shape = jax.ShapeDtypeStruct((S, B, E), out_dtype)

    on_tpu = jax.default_backend() == "tpu"
    # TODO(synk): on v7x, verify the single "parallel" seq axis is sharded
    # across both TensorCores; if not, switch to pltpu.CORE_PARALLEL.
    cparams = pltpu.CompilerParams(
        dimension_semantics=("parallel",),
        vmem_limit_bytes=int(vmem_limit_bytes),
    ) if on_tpu else None

    itemsize_in = token_embedding.dtype.itemsize
    cost = pl.CostEstimate(
        flops=2 * S * B * E,                       # scale-mul + add (+select)
        transcendentals=0,
        bytes_accessed=(S * B * E * itemsize_in          # read x
                        + S * E * 4                       # read pos rows
                        + S * B * E * out_dtype.itemsize))  # write out

    # Elementwise, same shape + same block index map -> aliasing x to the
    # output is safe and drops one (S,B,E) HBM allocation.  Only enabled on
    # the no-prefetch path (x is unambiguously input 0) and when dtypes match.
    can_alias = donate_input and (out_dtype == token_embedding.dtype)

    if not (training and dropout_p > 0.0):
        gs = pltpu.PrefetchScalarGridSpec(
            num_scalar_prefetch=0, grid=grid,
            in_specs=[x_spec, p_spec], out_specs=o_spec)
        return pl.pallas_call(
            partial(_pe_add_kernel, emb_scale=float(emb_scale)),
            grid_spec=gs, out_shape=out_shape, compiler_params=cparams,
            cost_estimate=cost,
            input_output_aliases={0: 0} if can_alias else {},
        )(token_embedding, pos_embedding)

    keep_threshold = min(int(round(float(dropout_p) * 2.0 ** 32)), 2 ** 32 - 1)
    keep_scale = 1.0 / (1.0 - float(dropout_p))

    if on_tpu:
        kernel = partial(_pe_add_dropout_prng_kernel,
                         emb_scale=float(emb_scale),
                         keep_threshold=keep_threshold, keep_scale=keep_scale)
        gs = pltpu.PrefetchScalarGridSpec(
            num_scalar_prefetch=1, grid=grid,
            in_specs=[x_spec, p_spec], out_specs=o_spec)
        seed_arr = jnp.array([seed], dtype=jnp.int32)
        # NOTE: aliasing here would target input index 1 (after the prefetched
        # seed); kept off to keep the operand numbering obvious.
        return pl.pallas_call(kernel, grid_spec=gs, out_shape=out_shape,
                              compiler_params=cparams, cost_estimate=cost)(
            seed_arr, token_embedding, pos_embedding)

    # Non-TPU fallback: pltpu.prng_* has no lowering off-TPU, so feed
    # pre-generated uniform bits through the same tiled pipeline.
    if rng_key is None:
        rng_key = jax.random.PRNGKey(seed)
    bits = jax.random.bits(rng_key, (S, B, E), dtype=jnp.uint32)
    kernel = partial(_pe_add_dropout_bits_kernel,
                     emb_scale=float(emb_scale),
                     keep_threshold=keep_threshold, keep_scale=keep_scale)
    gs = pltpu.PrefetchScalarGridSpec(
        num_scalar_prefetch=0, grid=grid,
        in_specs=[x_spec, p_spec,
                  pl.BlockSpec((ts, B, E), lambda i, *_: (i, 0, 0))],
        out_specs=o_spec)
    return pl.pallas_call(kernel, grid_spec=gs, out_shape=out_shape,
                          compiler_params=cparams, cost_estimate=cost,
                          input_output_aliases={0: 0} if can_alias else {})(
        token_embedding, pos_embedding, bits)


# ---------------------------------------------------------------------------
# Demo / self-test
# ---------------------------------------------------------------------------
if __name__ == "__main__":
    # Small shapes consistent with the module's (seq, batch, emb) layout.
    emb_size = 32
    dropout_p = 0.1
    maxlen = 64
    seq, batch = 8, 2

    pos_embedding = make_pos_embedding(emb_size, maxlen)
    key = jax.random.PRNGKey(0)
    x = jax.random.normal(key, (seq, batch, emb_size), dtype=jnp.float32)
    ref = x + pos_embedding[:seq]

    # 1) Eval mode (dropout is identity, scale=1) — exact PositionalEncoding.
    out = jax.block_until_ready(
        positional_encoding(x, pos_embedding, dropout_p, training=False))
    assert out.shape == (seq, batch, emb_size)
    assert jnp.allclose(out, ref, atol=1e-6), "eval-mode mismatch vs reference"

    # 2) Multi-tile grid on a lane/sublane-dense shape (B=8, E=128) with a
    #    small tile budget to force several grid steps, plus input aliasing.
    seq2, batch2, emb2, maxlen2 = 64, 8, 128, 128
    pos2 = make_pos_embedding(emb2, maxlen2)
    x2 = jax.random.normal(jax.random.PRNGKey(1), (seq2, batch2, emb2),
                           dtype=jnp.float32)
    ref2 = x2 + pos2[:seq2]
    out2 = jax.block_until_ready(
        positional_encoding(x2, pos2, dropout_p, training=False,
                            donate_input=True,
                            target_tile_bytes=64 * 1024))
    assert jnp.allclose(out2, ref2, atol=1e-6), "tiled/aliased mismatch"

    # 3) Fused WMTModel path: gathered token embeddings (gather left to XLA)
    #    with the TokenEmbedding sqrt(E) scale fused into the kernel.
    vocab = 64
    table = jax.random.normal(jax.random.PRNGKey(2), (vocab, emb_size),
                              dtype=jnp.float32)
    tokens = jax.random.randint(jax.random.PRNGKey(3), (seq, batch), 0, vocab)
    tok_emb = jnp.take(table, tokens, axis=0)      # TODO(synk): fuse gather too
    out3 = jax.block_until_ready(
        positional_encoding(tok_emb, pos_embedding, dropout_p, training=False,
                            emb_scale=math.sqrt(emb_size)))
    ref3 = tok_emb * math.sqrt(emb_size) + pos_embedding[:seq]
    assert jnp.allclose(out3, ref3, atol=1e-4, rtol=1e-5), "scale-fused mismatch"

    # 4) bf16 writeback path (halves store traffic); f32 math inside.
    out_bf16 = jax.block_until_ready(
        positional_encoding(x, pos_embedding, 0.0, training=False,
                            out_dtype=jnp.bfloat16))
    assert out_bf16.dtype == jnp.bfloat16
    assert jnp.allclose(out_bf16.astype(jnp.float32), ref,
                        atol=5e-2, rtol=5e-2), "bf16 output mismatch"

    # 5) Training mode (inverted dropout): every element must be either 0 or
    #    (x + pos) / (1 - p).
    out_tr = jax.block_until_ready(
        positional_encoding(x, pos_embedding, dropout_p, training=True,
                            seed=42))
    keep_scale = 1.0 / (1.0 - dropout_p)
    ok = jnp.isclose(out_tr, 0.0) | jnp.isclose(out_tr, ref * keep_scale,
                                                atol=1e-5, rtol=1e-5)
    assert bool(jnp.all(ok)), "dropout output not in {0, (x+pos)/(1-p)}"

    print("KERNEL_OK")
</pallas_src>

<mosaic_0001>
module attributes {stable_mosaic.version = 11 : i64} {
  func.func @_pe_add_kernel(%arg0: i32, %arg1: memref<8x2x32xf32, #tpu.memory_space<vmem>>, %arg2: memref<8x1x32xf32, #tpu.memory_space<vmem>>, %arg3: memref<8x2x32xf32, #tpu.memory_space<vmem>>) attributes {dimension_semantics = [#tpu.dimension_semantics<arbitrary>], iteration_bounds = array<i64: 1>, scalar_prefetch = 0 : i64, scratch_operands = 0 : i64, tpu.core_type = #tpu.core_type<tc>, window_params = [{transform_indices = @transform_0, window_bounds = array<i64: 8, 2, 32>}, {transform_indices = @transform_1, window_bounds = array<i64: 8, 1, 32>}, {transform_indices = @transform_2, window_bounds = array<i64: 8, 2, 32>}]} {
    %c0 = arith.constant 0 : index
    %c0_0 = arith.constant 0 : index
    %c0_1 = arith.constant 0 : index
    %0 = vector.load %arg1[%c0, %c0_0, %c0_1] : memref<8x2x32xf32, #tpu.memory_space<vmem>>, vector<8x2x32xf32>
    %c0_2 = arith.constant 0 : index
    %c0_3 = arith.constant 0 : index
    %c0_4 = arith.constant 0 : index
    %1 = vector.load %arg2[%c0_2, %c0_3, %c0_4] : memref<8x1x32xf32, #tpu.memory_space<vmem>>, vector<8x1x32xf32>
    %2 = vector.broadcast %1 : vector<8x1x32xf32> to vector<8x2x32xf32>
    %3 = arith.addf %0, %2 : vector<8x2x32xf32>
    %c0_5 = arith.constant 0 : index
    %c0_6 = arith.constant 0 : index
    %c0_7 = arith.constant 0 : index
    %4 = vector.load %arg3[%c0_5, %c0_6, %c0_7] : memref<8x2x32xf32, #tpu.memory_space<vmem>>, vector<8x2x32xf32>
    tpu.vector_store %arg3[%c0_5, %c0_6, %c0_7], %3 {strides = array<i32>} : memref<8x2x32xf32, #tpu.memory_space<vmem>>, vector<8x2x32xf32>,
    return
  }
  func.func @transform_0(%arg0: i32) -> (i32, i32, i32) {
    %c0_i32 = arith.constant 0 : i32
    %c0_i32_0 = arith.constant 0 : i32
    %c0_i32_1 = arith.constant 0 : i32
    return %arg0, %c0_i32, %c0_i32_0 : i32, i32, i32
  }
  func.func @transform_1(%arg0: i32) -> (i32, i32, i32) {
    %c0_i32 = arith.constant 0 : i32
    %c0_i32_0 = arith.constant 0 : i32
    %c0_i32_1 = arith.constant 0 : i32
    return %arg0, %c0_i32, %c0_i32_0 : i32, i32, i32
  }
  func.func @transform_2(%arg0: i32) -> (i32, i32, i32) {
    %c0_i32 = arith.constant 0 : i32
    %c0_i32_0 = arith.constant 0 : i32
    %c0_i32_1 = arith.constant 0 : i32
    return %arg0, %c0_i32, %c0_i32_0 : i32, i32, i32
  }
}

</mosaic_0001>

<bundles_post_ra>
// kernel: tpu_custom_call.1
= control target key start
LH: loop header
LB: loop body
LE: loop exit
PB: predicated region body
PF: predicated region fallthrough
CT: control target
= control target key end

     0   :  { %vm60_vm0 = vcmask 254976   ;;  %s201_s0 = inlined_call_operand.vmem [shape: f32[8,2,32], index: 0, kind: input, shape index: {}]   ;;  %s202_s1 = inlined_call_operand.vmem [shape: f32[64,1,32], index: 1, kind: input, shape index: {}]   ;;  %s203_s2 = inlined_call_operand.hbm [shape: f32[8,2,32], index: 2, kind: output, shape index: {}]  }
   0x1   :  { %v12_v0 = vld [vmem:[%s201_s0] sm:$0x3]  ;;  %v13_v2 = vld [vmem:[%s201_s0 + $0x2] sm:$0x3]  ;;  %v14_v5 = vld [vmem:[%s201_s0 + $0x4] sm:$0x3] }
   0x2   :  { %v90_v1 = vld [vmem:[%s202_s1] ss:$0 sm:$0xff]  ;;  %v91_v4 = vld [vmem:[%s202_s1 + $0x1] ss:$0 sm:$0xff]  ;;  %v92_v6 = vld [vmem:[%s202_s1 + $0x2] ss:$0 sm:$0xff] }
   0x3   :  { %v52_v3 = vadd.f32 %v90_v1, %v12_v0  ;;  %v15_v7 = vld [vmem:[%s201_s0 + $0x6] sm:$0x3]  ;;  %v53_v8 = vadd.f32 %v91_v4, %v13_v2  ;;  %v93_v9 = vld [vmem:[%s202_s1 + $0x3] ss:$0 sm:$0xff]  ;;  %v16_v10 = vld [vmem:[%s201_s0 + $0x8] sm:$0x3]  ;;  %v54_v11 = vadd.f32 %v92_v6, %v14_v5 }
   0x4   :  { %v94_v12 = vld [vmem:[%s202_s1 + $0x4] ss:$0 sm:$0xff]  ;;  %v17_v13 = vld [vmem:[%s201_s0 + $0xa] sm:$0x3]  ;;  %v55_v14 = vadd.f32 %v93_v9, %v15_v7  ;;  %v95_v15 = vld [vmem:[%s202_s1 + $0x5] ss:$0 sm:$0xff] }
   0x5   :  { %61 = vst.msk [vmem:[#allocation2] sm:$0x3] %vm60_vm0, %v52_v3  ;;  %v56_v16 = vadd.f32 %v94_v12, %v16_v10  ;;  %v18_v17 = vld [vmem:[%s201_s0 + $0xc] sm:$0x3]  ;;  %v57_v18 = vadd.f32 %v95_v15, %v17_v13  ;;  %v96_v19 = vld [vmem:[%s202_s1 + $0x6] ss:$0 sm:$0xff] }
   0x6   :  { %62 = vst.msk [vmem:[#allocation2 + $0x2] sm:$0x3] %vm60_vm0, %v53_v8  ;;  %v19_v20 = vld [vmem:[%s201_s0 + $0xe] sm:$0x3]  ;;  %v97_v21 = vld [vmem:[%s202_s1 + $0x7] ss:$0 sm:$0xff]  ;;  %v58_v22 = vadd.f32 %v96_v19, %v18_v17 }
   0x7   :  { %63 = vst.msk [vmem:[#allocation2 + $0x4] sm:$0x3] %vm60_vm0, %v54_v11 }
   0x8   :  { %64 = vst.msk [vmem:[#allocation2 + $0x6] sm:$0x3] %vm60_vm0, %v55_v14 }
   0x9   :  { %65 = vst.msk [vmem:[#allocation2 + $0x8] sm:$0x3] %vm60_vm0, %v56_v16 }
   0xa   :  { %66 = vst.msk [vmem:[#allocation2 + $0xa] sm:$0x3] %vm60_vm0, %v57_v18 }
   0xb   :  { %7 = vsyncpa [#allocation3], 0  ;;  %s124_s13 = smov [#allocation2]   ;;  %s75_s17 = sshll.u32 %s203_s2, 4  ;;  %v59_v23 = vadd.f32 %v97_v21, %v19_v20  ;;  %67 = vst.msk [vmem:[#allocation2 + $0xc] sm:$0x3] %vm60_vm0, %v58_v22  ;;  %s76_s17 = int_to_ptr.hbm [resolvable:$true] %s75_s17 }
   0xc   :  { %s73_s14 = sshll.u32 %s124_s13, 4  ;;  %s125_s0 = smov 32   ;;  %s74_s14 = int_to_ptr.vmem [resolvable:$true] %s73_s14 }
   0xd   :  { %68 = vst.msk [vmem:[#allocation2 + $0xe] sm:$0x3] %vm60_vm0, %v59_v23  ;;  %s126_s18 = smov 2  }
   0xe   :  { %81 = dma.vmem_to_hbm [thread:$0]  %s74_s14, 256, %s76_s17, [#allocation3], %s125_s0, %s125_s0, %s126_s18  }
   0xf   :  { %122 = dma.done.wait [#allocation3], 256  }
  0x10   :  { %123 = vsyncadd [#allocation3], 4294967040 }
  0x11   :  { %86 = vsyncpa [#allocation3], 1 }

</bundles_post_ra>
